<compile_context>
chip_gen: v6e
topology: v6e:2x2x1
jax: 0.10.0
libtpu: 0.0.40
codegen_flags: <defaults>
</compile_context>

<pallas_src>
import jax
import jax.numpy as jnp
from jax import lax
from jax.experimental import pallas as pl
from jax.experimental.pallas import tpu as pltpu

DIM = 64          # PROJECTION_DIM
HEADS = 4
HEAD_DIM = DIM // HEADS
MLP_DIM = 128
EPS = 1e-5        # nn.LayerNorm default
_SQRT2 = 1.4142135623730951

# f32 default preserves 1e-4 parity with the exact f32 reference.  Set to
# jnp.bfloat16 on v6e/v7x for ~2-4x MXU throughput (accumulation stays f32).
MATMUL_DTYPE = jnp.float32


def _layernorm(x, gamma, beta):
    # One-pass variance: E[x^2] - E[x]^2 -> two *independent* cross-lane
    # reductions (overlap on the XLU) instead of a serial pair.
    mu = jnp.mean(x, axis=-1, keepdims=True)
    ms = jnp.mean(x * x, axis=-1, keepdims=True)
    var = ms - mu * mu
    return (x - mu) * lax.rsqrt(var + EPS) * gamma + beta


def transformer_block_kernel(
    x_ref,                                   # (TB, S, D)
    wqkv_ref, bqkv_ref,                      # fused in-proj (wq pre-scaled)
    wo_ref, bo_ref,                          # attention out-proj
    g1_ref, be1_ref, g2_ref, be2_ref,        # layernorm 1 / 2
    w1_ref, b1_ref, w2_ref, b2_ref,          # MLP linears
    o_ref,                                   # (TB, S, D)
):
    TB, S, D = x_ref.shape
    M = TB * S

    # Flatten the batch tile so every projection/MLP matmul has M = TB*S rows.
    x = x_ref[...].astype(jnp.float32).reshape(M, D)

    # ---------------- attention branch: x + MHA(LN1(x)) ----------------
    h = _layernorm(x, g1_ref[...], be1_ref[...])
    qkv = jnp.dot(h.astype(MATMUL_DTYPE), wqkv_ref[...].astype(MATMUL_DTYPE),
                  preferred_element_type=jnp.float32) + bqkv_ref[...]
    # 1/sqrt(head_dim) already folded into the Q columns of wqkv/bqkv.
    q = qkv[:, 0 * D:1 * D].reshape(TB, S, D)
    k = qkv[:, 1 * D:2 * D].reshape(TB, S, D)
    v = qkv[:, 2 * D:3 * D].reshape(TB, S, D)

    # TODO(synk): replace this static per-head loop with a single head-batched
    # einsum ('bqhd,bkhd->bhqk') once multi-batch-dim dot_general lowering is
    # confirmed on this Mosaic version; single-batch 3-D einsums are used here
    # because they are known to lower cleanly.  Contexts stay in registers
    # (no VMEM scratch round trip) and are lane-concatenated once below.
    ctx_heads = []
    for hd in range(HEADS):                  # static unroll, 4 heads
        lo = hd * HEAD_DIM
        qh = q[:, :, lo:lo + HEAD_DIM]       # (TB, S, HEAD_DIM)
        kh = k[:, :, lo:lo + HEAD_DIM]
        vh = v[:, :, lo:lo + HEAD_DIM]
        s = jnp.einsum("bqd,bkd->bqk",
                       qh.astype(MATMUL_DTYPE), kh.astype(MATMUL_DTYPE),
                       preferred_element_type=jnp.float32)          # (TB,S,S)
        s = s - jnp.max(s, axis=-1, keepdims=True)
        p = jnp.exp(s)
        p = p * pl.reciprocal(jnp.sum(p, axis=-1, keepdims=True), approx=False)
        ah = jnp.einsum("bqk,bkd->bqd",
                        p.astype(MATMUL_DTYPE), vh.astype(MATMUL_DTYPE),
                        preferred_element_type=jnp.float32)          # (TB,S,HEAD_DIM)
        ctx_heads.append(ah)

    ctx = jnp.concatenate(ctx_heads, axis=-1).reshape(M, D)          # (M, D)
    attn = jnp.dot(ctx.astype(MATMUL_DTYPE), wo_ref[...].astype(MATMUL_DTYPE),
                   preferred_element_type=jnp.float32) + bo_ref[...]
    x = x + attn

    # ---------------- MLP branch: x + MLP(LN2(x)) ----------------
    h2 = _layernorm(x, g2_ref[...], be2_ref[...])
    m = jnp.dot(h2.astype(MATMUL_DTYPE), w1_ref[...].astype(MATMUL_DTYPE),
                preferred_element_type=jnp.float32) + b1_ref[...]
    m = 0.5 * m * (1.0 + lax.erf(m * (1.0 / _SQRT2)))   # exact GELU (PyTorch default)
    # TODO(synk): Dropout(p=0.3) is identity in eval mode; no train-mode dropout here.
    m = jnp.dot(m.astype(MATMUL_DTYPE), w2_ref[...].astype(MATMUL_DTYPE),
                preferred_element_type=jnp.float32) + b2_ref[...]
    x = x + m

    o_ref[...] = x.reshape(TB, S, D).astype(o_ref.dtype)


# --------------------------- tiling / VMEM budgeting ---------------------------
def _vmem_capacity_bytes():
    try:
        info = pltpu.get_tpu_info()
        cap = getattr(info, "vmem_capacity_bytes", None)
        if cap:
            return int(cap)
    except Exception:
        pass
    return 64 << 20   # conservative (v7x-sized) fallback


def _tile_bytes(rows, S):
    """Rough f32 footprint of one grid step's live intermediates + pipeline bufs."""
    per_row = 4 * (16 * DIM + 2 * MLP_DIM + 2 * HEADS * S)
    return rows * per_row + (2 << 20)        # + weights / compiler headroom


def _choose_tiling(B, S, max_rows):
    """Pick (batch_tile, n_steps, padded_B).

    * Tile rows capped at max_rows (VMEM / pipeline sweet spot).
    * Grid is forced to an even number of >=2 steps when B >= 2 so both v7x
      TensorCores get work; the tile is shrunk (not an extra full step added)
      so the zero-padding cost stays < one tile.
    """
    rows_target = max(1, max_rows // max(S, 1))
    n_steps = max(1, -(-B // rows_target))
    if B >= 2:
        n_steps = max(n_steps, 2)
        if n_steps % 2:
            n_steps += 1
    tb = -(-B // n_steps)
    return tb, n_steps, tb * n_steps


def transformer_block(x, params, *, max_rows_per_step=4096):
    B, S, D = x.shape
    assert D == DIM

    # Clamp the tile so it (plus temporaries and double buffers) fits ~3/4 of
    # this generation's VMEM; then set the scoped-VMEM limit explicitly
    # (mandatory on v5e whose default scoped limit is only 16 MiB).
    usable = (_vmem_capacity_bytes() * 3) // 4
    max_rows = max(int(max_rows_per_step), S)
    while max_rows > S and _tile_bytes(max_rows, S) > usable:
        max_rows //= 2

    TB, n_steps, B_pad = _choose_tiling(B, S, max_rows)
    vmem_limit = int(min(max(_tile_bytes(TB * S, S), 32 << 20), usable))

    x_in = x if B_pad == B else jnp.pad(x, ((0, B_pad - B), (0, 0), (0, 0)))

    weight_order = ("wqkv", "bqkv", "wo", "bo",
                    "g1", "be1", "g2", "be2",
                    "w1", "b1", "w2", "b2")
    weight_args = tuple(params[k] for k in weight_order)

    def wspec(arr):
        nd = arr.ndim
        return pl.BlockSpec(arr.shape, lambda b, _nd=nd: (0,) * _nd)

    in_specs = [pl.BlockSpec((TB, S, D), lambda b: (b, 0, 0))]
    in_specs += [wspec(w) for w in weight_args]

    out = pl.pallas_call(
        transformer_block_kernel,
        out_shape=jax.ShapeDtypeStruct((B_pad, S, D), x.dtype),
        grid_spec=pltpu.PrefetchScalarGridSpec(
            num_scalar_prefetch=0,
            grid=(n_steps,),
            in_specs=in_specs,
            out_specs=pl.BlockSpec((TB, S, D), lambda b: (b, 0, 0)),
        ),
        compiler_params=pltpu.CompilerParams(
            dimension_semantics=("parallel",),   # batch-tile axis -> both v7x TCs
            vmem_limit_bytes=vmem_limit,
        ),
    )(x_in, *weight_args)

    return out if B_pad == B else out[:B]


# --------------------------- parameter setup (glue) ---------------------------
def init_raw_params(key):
    """PyTorch-shaped parameters (Linear weights are (out, in))."""
    ks = jax.random.split(key, 12)
    s = 0.05
    return dict(
        in_proj_w=jax.random.normal(ks[0], (3 * DIM, DIM), jnp.float32) * s,
        in_proj_b=jax.random.normal(ks[1], (3 * DIM,), jnp.float32) * s,
        out_proj_w=jax.random.normal(ks[2], (DIM, DIM), jnp.float32) * s,
        out_proj_b=jax.random.normal(ks[3], (DIM,), jnp.float32) * s,
        w1=jax.random.normal(ks[4], (MLP_DIM, DIM), jnp.float32) * s,
        b1=jax.random.normal(ks[5], (MLP_DIM,), jnp.float32) * s,
        w2=jax.random.normal(ks[6], (DIM, MLP_DIM), jnp.float32) * s,
        b2=jax.random.normal(ks[7], (DIM,), jnp.float32) * s,
        g1=1.0 + 0.1 * jax.random.normal(ks[8], (DIM,), jnp.float32),
        be1=0.1 * jax.random.normal(ks[9], (DIM,), jnp.float32),
        g2=1.0 + 0.1 * jax.random.normal(ks[10], (DIM,), jnp.float32),
        be2=0.1 * jax.random.normal(ks[11], (DIM,), jnp.float32),
    )


def pack_params(raw):
    """Transpose to h @ W form, fuse QKV, fold 1/sqrt(head_dim) into the Q part."""
    scale = 1.0 / (HEAD_DIM ** 0.5)
    wq = raw["in_proj_w"][0 * DIM:1 * DIM]
    wk = raw["in_proj_w"][1 * DIM:2 * DIM]
    wv = raw["in_proj_w"][2 * DIM:3 * DIM]
    bq = raw["in_proj_b"][0 * DIM:1 * DIM]
    bk = raw["in_proj_b"][1 * DIM:2 * DIM]
    bv = raw["in_proj_b"][2 * DIM:3 * DIM]
    wqkv = jnp.concatenate([wq.T * scale, wk.T, wv.T], axis=1)   # (D, 3D)
    bqkv = jnp.concatenate([bq * scale, bk, bv]).reshape(1, 3 * DIM)
    return dict(
        wqkv=wqkv, bqkv=bqkv,
        wo=raw["out_proj_w"].T, bo=raw["out_proj_b"].reshape(1, DIM),
        g1=raw["g1"].reshape(1, DIM), be1=raw["be1"].reshape(1, DIM),
        g2=raw["g2"].reshape(1, DIM), be2=raw["be2"].reshape(1, DIM),
        w1=raw["w1"].T, b1=raw["b1"].reshape(1, MLP_DIM),
        w2=raw["w2"].T, b2=raw["b2"].reshape(1, DIM),
    )


def reference(x, raw):
    """Pure-JAX forward identical to the PyTorch module (eval mode)."""
    def ln(h, g, b):
        mu = jnp.mean(h, -1, keepdims=True)
        var = jnp.mean((h - mu) ** 2, -1, keepdims=True)
        return (h - mu) / jnp.sqrt(var + EPS) * g + b

    B, S, D = x.shape
    with jax.default_matmul_precision("highest"):
        h = ln(x, raw["g1"], raw["be1"])
        qkv = h @ raw["in_proj_w"].T + raw["in_proj_b"]
        q, k, v = jnp.split(qkv, 3, axis=-1)
        q = q.reshape(B, S, HEADS, HEAD_DIM).transpose(0, 2, 1, 3)
        k = k.reshape(B, S, HEADS, HEAD_DIM).transpose(0, 2, 1, 3)
        v = v.reshape(B, S, HEADS, HEAD_DIM).transpose(0, 2, 1, 3)
        s = jnp.einsum("bhqd,bhkd->bhqk", q, k) / (HEAD_DIM ** 0.5)
        p = jax.nn.softmax(s, axis=-1)
        a = jnp.einsum("bhqk,bhkd->bhqd", p, v).transpose(0, 2, 1, 3).reshape(B, S, D)
        x = x + a @ raw["out_proj_w"].T + raw["out_proj_b"]
        h2 = ln(x, raw["g2"], raw["be2"])
        m = h2 @ raw["w1"].T + raw["b1"]
        m = 0.5 * m * (1.0 + lax.erf(m / _SQRT2))
        m = m @ raw["w2"].T + raw["b2"]
        return x + m


if __name__ == "__main__":
    key = jax.random.PRNGKey(0)
    kx, kp = jax.random.split(key)
    B, S = 2, 8
    x = jax.random.normal(kx, (B, S, DIM), jnp.float32)

    raw = init_raw_params(kp)
    params = pack_params(raw)

    out = transformer_block(x, params)
    out = jax.block_until_ready(out)

    ref = reference(x, raw)
    assert out.shape == (B, S, DIM)
    tol = 1e-4 if MATMUL_DTYPE == jnp.float32 else 2e-2
    max_err = float(jnp.max(jnp.abs(out - ref)))
    assert jnp.allclose(out, ref, atol=tol, rtol=tol), (
        f"mismatch vs JAX reference, max abs err {max_err}")
    print("KERNEL_OK")
</pallas_src>

<mosaic_0001>
module attributes {stable_mosaic.version = 11 : i64} {
  func.func @transformer_block_kernel(%arg0: i32, %arg1: memref<1x8x64xf32, #tpu.memory_space<vmem>>, %arg2: memref<64x192xf32, #tpu.memory_space<vmem>>, %arg3: memref<1x192xf32, #tpu.memory_space<vmem>>, %arg4: memref<64x64xf32, #tpu.memory_space<vmem>>, %arg5: memref<1x64xf32, #tpu.memory_space<vmem>>, %arg6: memref<1x64xf32, #tpu.memory_space<vmem>>, %arg7: memref<1x64xf32, #tpu.memory_space<vmem>>, %arg8: memref<1x64xf32, #tpu.memory_space<vmem>>, %arg9: memref<1x64xf32, #tpu.memory_space<vmem>>, %arg10: memref<64x128xf32, #tpu.memory_space<vmem>>, %arg11: memref<1x128xf32, #tpu.memory_space<vmem>>, %arg12: memref<128x64xf32, #tpu.memory_space<vmem>>, %arg13: memref<1x64xf32, #tpu.memory_space<vmem>>, %arg14: memref<1x8x64xf32, #tpu.memory_space<vmem>>) attributes {dimension_semantics = [#tpu.dimension_semantics<parallel>], iteration_bounds = array<i64: 2>, scalar_prefetch = 0 : i64, scratch_operands = 0 : i64, tpu.core_type = #tpu.core_type<tc>, window_params = [{transform_indices = @transform_0, window_bounds = array<i64: 1, 8, 64>}, {pipeline_mode = #tpu.pipeline_mode<synchronous>, transform_indices = @transform_1, window_bounds = array<i64: 64, 192>}, {pipeline_mode = #tpu.pipeline_mode<synchronous>, transform_indices = @transform_2, window_bounds = array<i64: 1, 192>}, {pipeline_mode = #tpu.pipeline_mode<synchronous>, transform_indices = @transform_3, window_bounds = array<i64: 64, 64>}, {pipeline_mode = #tpu.pipeline_mode<synchronous>, transform_indices = @transform_4, window_bounds = array<i64: 1, 64>}, {pipeline_mode = #tpu.pipeline_mode<synchronous>, transform_indices = @transform_5, window_bounds = array<i64: 1, 64>}, {pipeline_mode = #tpu.pipeline_mode<synchronous>, transform_indices = @transform_6, window_bounds = array<i64: 1, 64>}, {pipeline_mode = #tpu.pipeline_mode<synchronous>, transform_indices = @transform_7, window_bounds = array<i64: 1, 64>}, {pipeline_mode = #tpu.pipeline_mode<synchronous>, transform_indices = @transform_8, window_bounds = array<i64: 1, 64>}, {pipeline_mode = #tpu.pipeline_mode<synchronous>, transform_indices = @transform_9, window_bounds = array<i64: 64, 128>}, {pipeline_mode = #tpu.pipeline_mode<synchronous>, transform_indices = @transform_10, window_bounds = array<i64: 1, 128>}, {pipeline_mode = #tpu.pipeline_mode<synchronous>, transform_indices = @transform_11, window_bounds = array<i64: 128, 64>}, {pipeline_mode = #tpu.pipeline_mode<synchronous>, transform_indices = @transform_12, window_bounds = array<i64: 1, 64>}, {transform_indices = @transform_13, window_bounds = array<i64: 1, 8, 64>}]} {
    %c0 = arith.constant 0 : index
    %c0_0 = arith.constant 0 : index
    %c0_1 = arith.constant 0 : index
    %0 = vector.load %arg1[%c0, %c0_0, %c0_1] : memref<1x8x64xf32, #tpu.memory_space<vmem>>, vector<1x8x64xf32>
    %1 = vector.shape_cast %0 : vector<1x8x64xf32> to vector<8x64xf32>
    %c0_2 = arith.constant 0 : index
    %c0_3 = arith.constant 0 : index
    %2 = vector.load %arg6[%c0_2, %c0_3] : memref<1x64xf32, #tpu.memory_space<vmem>>, vector<1x64xf32>
    %c0_4 = arith.constant 0 : index
    %c0_5 = arith.constant 0 : index
    %3 = vector.load %arg7[%c0_4, %c0_5] : memref<1x64xf32, #tpu.memory_space<vmem>>, vector<1x64xf32>
    %cst = arith.constant dense<0.000000e+00> : vector<8xf32>
    %4 = vector.multi_reduction <add>, %1, %cst [1] : vector<8x64xf32> to vector<8xf32>
    %5 = vector.shape_cast %4 : vector<8xf32> to vector<8x1xf32>
    %cst_6 = arith.constant 6.400000e+01 : f32
    %6 = vector.broadcast %cst_6 : f32 to vector<8x1xf32>
    %7 = arith.divf %5, %6 : vector<8x1xf32>
    %8 = arith.mulf %1, %1 : vector<8x64xf32>
    %cst_7 = arith.constant dense<0.000000e+00> : vector<8xf32>
    %9 = vector.multi_reduction <add>, %8, %cst_7 [1] : vector<8x64xf32> to vector<8xf32>
    %10 = vector.shape_cast %9 : vector<8xf32> to vector<8x1xf32>
    %cst_8 = arith.constant 6.400000e+01 : f32
    %11 = vector.broadcast %cst_8 : f32 to vector<8x1xf32>
    %12 = arith.divf %10, %11 : vector<8x1xf32>
    %13 = arith.mulf %7, %7 : vector<8x1xf32>
    %14 = arith.subf %12, %13 : vector<8x1xf32>
    %15 = vector.broadcast %7 : vector<8x1xf32> to vector<8x64xf32>
    %16 = arith.subf %1, %15 : vector<8x64xf32>
    %cst_9 = arith.constant 9.99999974E-6 : f32
    %17 = vector.broadcast %cst_9 : f32 to vector<8x1xf32>
    %18 = arith.addf %14, %17 : vector<8x1xf32>
    %19 = math.rsqrt %18 : vector<8x1xf32>
    %20 = vector.broadcast %19 : vector<8x1xf32> to vector<8x64xf32>
    %21 = arith.mulf %16, %20 : vector<8x64xf32>
    %22 = vector.broadcast %2 : vector<1x64xf32> to vector<8x64xf32>
    %23 = arith.mulf %21, %22 : vector<8x64xf32>
    %24 = vector.broadcast %3 : vector<1x64xf32> to vector<8x64xf32>
    %25 = arith.addf %23, %24 : vector<8x64xf32>
    %c0_10 = arith.constant 0 : index
    %c0_11 = arith.constant 0 : index
    %26 = vector.load %arg2[%c0_10, %c0_11] : memref<64x192xf32, #tpu.memory_space<vmem>>, vector<64x192xf32>
    %cst_12 = arith.constant dense<0.000000e+00> : vector<8x192xf32>
    %27 = tpu.matmul %25, %26, %cst_12 {dimension_numbers = #tpu.dot_dimension_numbers<[1], [0], [0], [1], [0, 0, 1, 1], [], []>} : vector<8x64xf32>, vector<64x192xf32>, vector<8x192xf32> -> vector<8x192xf32>
    %c0_13 = arith.constant 0 : index
    %c0_14 = arith.constant 0 : index
    %28 = vector.load %arg3[%c0_13, %c0_14] : memref<1x192xf32, #tpu.memory_space<vmem>>, vector<1x192xf32>
    %29 = vector.broadcast %28 : vector<1x192xf32> to vector<8x192xf32>
    %30 = arith.addf %27, %29 : vector<8x192xf32>
    %31 = vector.extract_strided_slice %30 {offsets = [0, 0], sizes = [8, 64], strides = [1, 1]} : vector<8x192xf32> to vector<8x64xf32>
    %32 = vector.shape_cast %31 : vector<8x64xf32> to vector<1x8x64xf32>
    %33 = vector.extract_strided_slice %30 {offsets = [0, 64], sizes = [8, 64], strides = [1, 1]} : vector<8x192xf32> to vector<8x64xf32>
    %34 = vector.shape_cast %33 : vector<8x64xf32> to vector<1x8x64xf32>
    %35 = vector.extract_strided_slice %30 {offsets = [0, 128], sizes = [8, 64], strides = [1, 1]} : vector<8x192xf32> to vector<8x64xf32>
    %36 = vector.shape_cast %35 : vector<8x64xf32> to vector<1x8x64xf32>
    %37 = vector.extract_strided_slice %32 {offsets = [0, 0, 0], sizes = [1, 8, 16], strides = [1, 1, 1]} : vector<1x8x64xf32> to vector<1x8x16xf32>
    %38 = vector.extract_strided_slice %34 {offsets = [0, 0, 0], sizes = [1, 8, 16], strides = [1, 1, 1]} : vector<1x8x64xf32> to vector<1x8x16xf32>
    %39 = vector.extract_strided_slice %36 {offsets = [0, 0, 0], sizes = [1, 8, 16], strides = [1, 1, 1]} : vector<1x8x64xf32> to vector<1x8x16xf32>
    "tpu.trace_start"() <{level = 10 : i32, message = "bqd,bkd->bqk"}> : () -> ()
    %cst_15 = arith.constant dense<0.000000e+00> : vector<1x8x8xf32>
    %40 = tpu.matmul %37, %38, %cst_15 {dimension_numbers = #tpu.dot_dimension_numbers<[2], [2], [1], [1], [0, 0, 0, 1, 1, 1], [0], [0]>} : vector<1x8x16xf32>, vector<1x8x16xf32>, vector<1x8x8xf32> -> vector<1x8x8xf32>
    "tpu.trace_stop"() : () -> ()
    %cst_16 = arith.constant dense<0xFF800000> : vector<1x8xf32>
    %41 = vector.multi_reduction <maximumf>, %40, %cst_16 [2] : vector<1x8x8xf32> to vector<1x8xf32>
    %42 = vector.shape_cast %41 : vector<1x8xf32> to vector<1x8x1xf32>
    %43 = vector.broadcast %42 : vector<1x8x1xf32> to vector<1x8x8xf32>
    %44 = arith.subf %40, %43 : vector<1x8x8xf32>
    %45 = math.exp %44 : vector<1x8x8xf32>
    %cst_17 = arith.constant dense<0.000000e+00> : vector<1x8xf32>
    %46 = vector.multi_reduction <add>, %45, %cst_17 [2] : vector<1x8x8xf32> to vector<1x8xf32>
    %47 = vector.shape_cast %46 : vector<1x8xf32> to vector<1x8x1xf32>
    %48 = tpu.reciprocal %47 : vector<1x8x1xf32> -> vector<1x8x1xf32>
    %49 = vector.broadcast %48 : vector<1x8x1xf32> to vector<1x8x8xf32>
    %50 = arith.mulf %45, %49 : vector<1x8x8xf32>
    "tpu.trace_start"() <{level = 10 : i32, message = "bqk,bkd->bqd"}> : () -> ()
    %cst_18 = arith.constant dense<0.000000e+00> : vector<1x8x16xf32>
    %51 = tpu.matmul %50, %39, %cst_18 {dimension_numbers = #tpu.dot_dimension_numbers<[2], [1], [1], [2], [0, 0, 0, 1, 1, 2], [0], [0]>} : vector<1x8x8xf32>, vector<1x8x16xf32>, vector<1x8x16xf32> -> vector<1x8x16xf32>
    "tpu.trace_stop"() : () -> ()
    %52 = vector.extract_strided_slice %32 {offsets = [0, 0, 16], sizes = [1, 8, 16], strides = [1, 1, 1]} : vector<1x8x64xf32> to vector<1x8x16xf32>
    %53 = vector.extract_strided_slice %34 {offsets = [0, 0, 16], sizes = [1, 8, 16], strides = [1, 1, 1]} : vector<1x8x64xf32> to vector<1x8x16xf32>
    %54 = vector.extract_strided_slice %36 {offsets = [0, 0, 16], sizes = [1, 8, 16], strides = [1, 1, 1]} : vector<1x8x64xf32> to vector<1x8x16xf32>
    "tpu.trace_start"() <{level = 10 : i32, message = "bqd,bkd->bqk"}> : () -> ()
    %cst_19 = arith.constant dense<0.000000e+00> : vector<1x8x8xf32>
    %55 = tpu.matmul %52, %53, %cst_19 {dimension_numbers = #tpu.dot_dimension_numbers<[2], [2], [1], [1], [0, 0, 0, 1, 1, 1], [0], [0]>} : vector<1x8x16xf32>, vector<1x8x16xf32>, vector<1x8x8xf32> -> vector<1x8x8xf32>
    "tpu.trace_stop"() : () -> ()
    %cst_20 = arith.constant dense<0xFF800000> : vector<1x8xf32>
    %56 = vector.multi_reduction <maximumf>, %55, %cst_20 [2] : vector<1x8x8xf32> to vector<1x8xf32>
    %57 = vector.shape_cast %56 : vector<1x8xf32> to vector<1x8x1xf32>
    %58 = vector.broadcast %57 : vector<1x8x1xf32> to vector<1x8x8xf32>
    %59 = arith.subf %55, %58 : vector<1x8x8xf32>
    %60 = math.exp %59 : vector<1x8x8xf32>
    %cst_21 = arith.constant dense<0.000000e+00> : vector<1x8xf32>
    %61 = vector.multi_reduction <add>, %60, %cst_21 [2] : vector<1x8x8xf32> to vector<1x8xf32>
    %62 = vector.shape_cast %61 : vector<1x8xf32> to vector<1x8x1xf32>
    %63 = tpu.reciprocal %62 : vector<1x8x1xf32> -> vector<1x8x1xf32>
    %64 = vector.broadcast %63 : vector<1x8x1xf32> to vector<1x8x8xf32>
    %65 = arith.mulf %60, %64 : vector<1x8x8xf32>
    "tpu.trace_start"() <{level = 10 : i32, message = "bqk,bkd->bqd"}> : () -> ()
    %cst_22 = arith.constant dense<0.000000e+00> : vector<1x8x16xf32>
    %66 = tpu.matmul %65, %54, %cst_22 {dimension_numbers = #tpu.dot_dimension_numbers<[2], [1], [1], [2], [0, 0, 0, 1, 1, 2], [0], [0]>} : vector<1x8x8xf32>, vector<1x8x16xf32>, vector<1x8x16xf32> -> vector<1x8x16xf32>
    "tpu.trace_stop"() : () -> ()
    %67 = vector.extract_strided_slice %32 {offsets = [0, 0, 32], sizes = [1, 8, 16], strides = [1, 1, 1]} : vector<1x8x64xf32> to vector<1x8x16xf32>
    %68 = vector.extract_strided_slice %34 {offsets = [0, 0, 32], sizes = [1, 8, 16], strides = [1, 1, 1]} : vector<1x8x64xf32> to vector<1x8x16xf32>
    %69 = vector.extract_strided_slice %36 {offsets = [0, 0, 32], sizes = [1, 8, 16], strides = [1, 1, 1]} : vector<1x8x64xf32> to vector<1x8x16xf32>
    "tpu.trace_start"() <{level = 10 : i32, message = "bqd,bkd->bqk"}> : () -> ()
    %cst_23 = arith.constant dense<0.000000e+00> : vector<1x8x8xf32>
    %70 = tpu.matmul %67, %68, %cst_23 {dimension_numbers = #tpu.dot_dimension_numbers<[2], [2], [1], [1], [0, 0, 0, 1, 1, 1], [0], [0]>} : vector<1x8x16xf32>, vector<1x8x16xf32>, vector<1x8x8xf32> -> vector<1x8x8xf32>
    "tpu.trace_stop"() : () -> ()
    %cst_24 = arith.constant dense<0xFF800000> : vector<1x8xf32>
    %71 = vector.multi_reduction <maximumf>, %70, %cst_24 [2] : vector<1x8x8xf32> to vector<1x8xf32>
    %72 = vector.shape_cast %71 : vector<1x8xf32> to vector<1x8x1xf32>
    %73 = vector.broadcast %72 : vector<1x8x1xf32> to vector<1x8x8xf32>
    %74 = arith.subf %70, %73 : vector<1x8x8xf32>
    %75 = math.exp %74 : vector<1x8x8xf32>
    %cst_25 = arith.constant dense<0.000000e+00> : vector<1x8xf32>
    %76 = vector.multi_reduction <add>, %75, %cst_25 [2] : vector<1x8x8xf32> to vector<1x8xf32>
    %77 = vector.shape_cast %76 : vector<1x8xf32> to vector<1x8x1xf32>
    %78 = tpu.reciprocal %77 : vector<1x8x1xf32> -> vector<1x8x1xf32>
    %79 = vector.broadcast %78 : vector<1x8x1xf32> to vector<1x8x8xf32>
    %80 = arith.mulf %75, %79 : vector<1x8x8xf32>
    "tpu.trace_start"() <{level = 10 : i32, message = "bqk,bkd->bqd"}> : () -> ()
    %cst_26 = arith.constant dense<0.000000e+00> : vector<1x8x16xf32>
    %81 = tpu.matmul %80, %69, %cst_26 {dimension_numbers = #tpu.dot_dimension_numbers<[2], [1], [1], [2], [0, 0, 0, 1, 1, 2], [0], [0]>} : vector<1x8x8xf32>, vector<1x8x16xf32>, vector<1x8x16xf32> -> vector<1x8x16xf32>
    "tpu.trace_stop"() : () -> ()
    %82 = vector.extract_strided_slice %32 {offsets = [0, 0, 48], sizes = [1, 8, 16], strides = [1, 1, 1]} : vector<1x8x64xf32> to vector<1x8x16xf32>
    %83 = vector.extract_strided_slice %34 {offsets = [0, 0, 48], sizes = [1, 8, 16], strides = [1, 1, 1]} : vector<1x8x64xf32> to vector<1x8x16xf32>
    %84 = vector.extract_strided_slice %36 {offsets = [0, 0, 48], sizes = [1, 8, 16], strides = [1, 1, 1]} : vector<1x8x64xf32> to vector<1x8x16xf32>
    "tpu.trace_start"() <{level = 10 : i32, message = "bqd,bkd->bqk"}> : () -> ()
    %cst_27 = arith.constant dense<0.000000e+00> : vector<1x8x8xf32>
    %85 = tpu.matmul %82, %83, %cst_27 {dimension_numbers = #tpu.dot_dimension_numbers<[2], [2], [1], [1], [0, 0, 0, 1, 1, 1], [0], [0]>} : vector<1x8x16xf32>, vector<1x8x16xf32>, vector<1x8x8xf32> -> vector<1x8x8xf32>
    "tpu.trace_stop"() : () -> ()
    %cst_28 = arith.constant dense<0xFF800000> : vector<1x8xf32>
    %86 = vector.multi_reduction <maximumf>, %85, %cst_28 [2] : vector<1x8x8xf32> to vector<1x8xf32>
    %87 = vector.shape_cast %86 : vector<1x8xf32> to vector<1x8x1xf32>
    %88 = vector.broadcast %87 : vector<1x8x1xf32> to vector<1x8x8xf32>
    %89 = arith.subf %85, %88 : vector<1x8x8xf32>
    %90 = math.exp %89 : vector<1x8x8xf32>
    %cst_29 = arith.constant dense<0.000000e+00> : vector<1x8xf32>
    %91 = vector.multi_reduction <add>, %90, %cst_29 [2] : vector<1x8x8xf32> to vector<1x8xf32>
    %92 = vector.shape_cast %91 : vector<1x8xf32> to vector<1x8x1xf32>
    %93 = tpu.reciprocal %92 : vector<1x8x1xf32> -> vector<1x8x1xf32>
    %94 = vector.broadcast %93 : vector<1x8x1xf32> to vector<1x8x8xf32>
    %95 = arith.mulf %90, %94 : vector<1x8x8xf32>
    "tpu.trace_start"() <{level = 10 : i32, message = "bqk,bkd->bqd"}> : () -> ()
    %cst_30 = arith.constant dense<0.000000e+00> : vector<1x8x16xf32>
    %96 = tpu.matmul %95, %84, %cst_30 {dimension_numbers = #tpu.dot_dimension_numbers<[2], [1], [1], [2], [0, 0, 0, 1, 1, 2], [0], [0]>} : vector<1x8x8xf32>, vector<1x8x16xf32>, vector<1x8x16xf32> -> vector<1x8x16xf32>
    "tpu.trace_stop"() : () -> ()
    %97 = tpu.concatenate %51, %66, %81, %96 in 2 : vector<1x8x16xf32>, vector<1x8x16xf32>, vector<1x8x16xf32>, vector<1x8x16xf32> -> vector<1x8x64xf32>
    %98 = vector.shape_cast %97 : vector<1x8x64xf32> to vector<8x64xf32>
    %c0_31 = arith.constant 0 : index
    %c0_32 = arith.constant 0 : index
    %99 = vector.load %arg4[%c0_31, %c0_32] : memref<64x64xf32, #tpu.memory_space<vmem>>, vector<64x64xf32>
    %cst_33 = arith.constant dense<0.000000e+00> : vector<8x64xf32>
    %100 = tpu.matmul %98, %99, %cst_33 {dimension_numbers = #tpu.dot_dimension_numbers<[1], [0], [0], [1], [0, 0, 1, 1], [], []>} : vector<8x64xf32>, vector<64x64xf32>, vector<8x64xf32> -> vector<8x64xf32>
    %c0_34 = arith.constant 0 : index
    %c0_35 = arith.constant 0 : index
    %101 = vector.load %arg5[%c0_34, %c0_35] : memref<1x64xf32, #tpu.memory_space<vmem>>, vector<1x64xf32>
    %102 = vector.broadcast %101 : vector<1x64xf32> to vector<8x64xf32>
    %103 = arith.addf %100, %102 : vector<8x64xf32>
    %104 = arith.addf %1, %103 : vector<8x64xf32>
    %c0_36 = arith.constant 0 : index
    %c0_37 = arith.constant 0 : index
    %105 = vector.load %arg8[%c0_36, %c0_37] : memref<1x64xf32, #tpu.memory_space<vmem>>, vector<1x64xf32>
    %c0_38 = arith.constant 0 : index
    %c0_39 = arith.constant 0 : index
    %106 = vector.load %arg9[%c0_38, %c0_39] : memref<1x64xf32, #tpu.memory_space<vmem>>, vector<1x64xf32>
    %cst_40 = arith.constant dense<0.000000e+00> : vector<8xf32>
    %107 = vector.multi_reduction <add>, %104, %cst_40 [1] : vector<8x64xf32> to vector<8xf32>
    %108 = vector.shape_cast %107 : vector<8xf32> to vector<8x1xf32>
    %cst_41 = arith.constant 6.400000e+01 : f32
    %109 = vector.broadcast %cst_41 : f32 to vector<8x1xf32>
    %110 = arith.divf %108, %109 : vector<8x1xf32>
    %111 = arith.mulf %104, %104 : vector<8x64xf32>
    %cst_42 = arith.constant dense<0.000000e+00> : vector<8xf32>
    %112 = vector.multi_reduction <add>, %111, %cst_42 [1] : vector<8x64xf32> to vector<8xf32>
    %113 = vector.shape_cast %112 : vector<8xf32> to vector<8x1xf32>
    %cst_43 = arith.constant 6.400000e+01 : f32
    %114 = vector.broadcast %cst_43 : f32 to vector<8x1xf32>
    %115 = arith.divf %113, %114 : vector<8x1xf32>
    %116 = arith.mulf %110, %110 : vector<8x1xf32>
    %117 = arith.subf %115, %116 : vector<8x1xf32>
    %118 = vector.broadcast %110 : vector<8x1xf32> to vector<8x64xf32>
    %119 = arith.subf %104, %118 : vector<8x64xf32>
    %cst_44 = arith.constant 9.99999974E-6 : f32
    %120 = vector.broadcast %cst_44 : f32 to vector<8x1xf32>
    %121 = arith.addf %117, %120 : vector<8x1xf32>
    %122 = math.rsqrt %121 : vector<8x1xf32>
    %123 = vector.broadcast %122 : vector<8x1xf32> to vector<8x64xf32>
    %124 = arith.mulf %119, %123 : vector<8x64xf32>
    %125 = vector.broadcast %105 : vector<1x64xf32> to vector<8x64xf32>
    %126 = arith.mulf %124, %125 : vector<8x64xf32>
    %127 = vector.broadcast %106 : vector<1x64xf32> to vector<8x64xf32>
    %128 = arith.addf %126, %127 : vector<8x64xf32>
    %c0_45 = arith.constant 0 : index
    %c0_46 = arith.constant 0 : index
    %129 = vector.load %arg10[%c0_45, %c0_46] : memref<64x128xf32, #tpu.memory_space<vmem>>, vector<64x128xf32>
    %cst_47 = arith.constant dense<0.000000e+00> : vector<8x128xf32>
    %130 = tpu.matmul %128, %129, %cst_47 {dimension_numbers = #tpu.dot_dimension_numbers<[1], [0], [0], [1], [0, 0, 1, 1], [], []>} : vector<8x64xf32>, vector<64x128xf32>, vector<8x128xf32> -> vector<8x128xf32>
    %c0_48 = arith.constant 0 : index
    %c0_49 = arith.constant 0 : index
    %131 = vector.load %arg11[%c0_48, %c0_49] : memref<1x128xf32, #tpu.memory_space<vmem>>, vector<1x128xf32>
    %132 = vector.broadcast %131 : vector<1x128xf32> to vector<8x128xf32>
    %133 = arith.addf %130, %132 : vector<8x128xf32>
    %cst_50 = arith.constant 5.000000e-01 : f32
    %134 = vector.broadcast %cst_50 : f32 to vector<8x128xf32>
    %135 = arith.mulf %134, %133 : vector<8x128xf32>
    %cst_51 = arith.constant 0.707106769 : f32
    %136 = vector.broadcast %cst_51 : f32 to vector<8x128xf32>
    %137 = arith.mulf %133, %136 : vector<8x128xf32>
    %138 = math.erf %137 : vector<8x128xf32>
    %cst_52 = arith.constant 1.000000e+00 : f32
    %139 = vector.broadcast %cst_52 : f32 to vector<8x128xf32>
    %140 = arith.addf %139, %138 : vector<8x128xf32>
    %141 = arith.mulf %135, %140 : vector<8x128xf32>
    %c0_53 = arith.constant 0 : index
    %c0_54 = arith.constant 0 : index
    %142 = vector.load %arg12[%c0_53, %c0_54] : memref<128x64xf32, #tpu.memory_space<vmem>>, vector<128x64xf32>
    %cst_55 = arith.constant dense<0.000000e+00> : vector<8x64xf32>
    %143 = tpu.matmul %141, %142, %cst_55 {dimension_numbers = #tpu.dot_dimension_numbers<[1], [0], [0], [1], [0, 0, 1, 1], [], []>} : vector<8x128xf32>, vector<128x64xf32>, vector<8x64xf32> -> vector<8x64xf32>
    %c0_56 = arith.constant 0 : index
    %c0_57 = arith.constant 0 : index
    %144 = vector.load %arg13[%c0_56, %c0_57] : memref<1x64xf32, #tpu.memory_space<vmem>>, vector<1x64xf32>
    %145 = vector.broadcast %144 : vector<1x64xf32> to vector<8x64xf32>
    %146 = arith.addf %143, %145 : vector<8x64xf32>
    %147 = arith.addf %104, %146 : vector<8x64xf32>
    %148 = vector.shape_cast %147 : vector<8x64xf32> to vector<1x8x64xf32>
    %c0_58 = arith.constant 0 : index
    %c0_59 = arith.constant 0 : index
    %c0_60 = arith.constant 0 : index
    %149 = vector.load %arg14[%c0_58, %c0_59, %c0_60] : memref<1x8x64xf32, #tpu.memory_space<vmem>>, vector<1x8x64xf32>
    tpu.vector_store %arg14[%c0_58, %c0_59, %c0_60], %148 {strides = array<i32>} : memref<1x8x64xf32, #tpu.memory_space<vmem>>, vector<1x8x64xf32>,
    return
  }
  func.func @transform_0(%arg0: i32) -> (i32, i32, i32) {
    %c0_i32 = arith.constant 0 : i32
    %c0_i32_0 = arith.constant 0 : i32
    %c0_i32_1 = arith.constant 0 : i32
    return %arg0, %c0_i32, %c0_i32_0 : i32, i32, i32
  }
  func.func @transform_1(%arg0: i32) -> (i32, i32) {
    %c0_i32 = arith.constant 0 : i32
    %c0_i32_0 = arith.constant 0 : i32
    %c0_i32_1 = arith.constant 0 : i32
    return %c0_i32, %c0_i32_0 : i32, i32
  }
  func.func @transform_2(%arg0: i32) -> (i32, i32) {
    %c0_i32 = arith.constant 0 : i32
    %c0_i32_0 = arith.constant 0 : i32
    %c0_i32_1 = arith.constant 0 : i32
    return %c0_i32, %c0_i32_0 : i32, i32
  }
  func.func @transform_3(%arg0: i32) -> (i32, i32) {
    %c0_i32 = arith.constant 0 : i32
    %c0_i32_0 = arith.constant 0 : i32
    %c0_i32_1 = arith.constant 0 : i32
    return %c0_i32, %c0_i32_0 : i32, i32
  }
  func.func @transform_4(%arg0: i32) -> (i32, i32) {
    %c0_i32 = arith.constant 0 : i32
    %c0_i32_0 = arith.constant 0 : i32
    %c0_i32_1 = arith.constant 0 : i32
    return %c0_i32, %c0_i32_0 : i32, i32
  }
  func.func @transform_5(%arg0: i32) -> (i32, i32) {
    %c0_i32 = arith.constant 0 : i32
    %c0_i32_0 = arith.constant 0 : i32
    %c0_i32_1 = arith.constant 0 : i32
    return %c0_i32, %c0_i32_0 : i32, i32
  }
  func.func @transform_6(%arg0: i32) -> (i32, i32) {
    %c0_i32 = arith.constant 0 : i32
    %c0_i32_0 = arith.constant 0 : i32
    %c0_i32_1 = arith.constant 0 : i32
    return %c0_i32, %c0_i32_0 : i32, i32
  }
  func.func @transform_7(%arg0: i32) -> (i32, i32) {
    %c0_i32 = arith.constant 0 : i32
    %c0_i32_0 = arith.constant 0 : i32
    %c0_i32_1 = arith.constant 0 : i32
    return %c0_i32, %c0_i32_0 : i32, i32
  }
  func.func @transform_8(%arg0: i32) -> (i32, i32) {
    %c0_i32 = arith.constant 0 : i32
    %c0_i32_0 = arith.constant 0 : i32
    %c0_i32_1 = arith.constant 0 : i32
    return %c0_i32, %c0_i32_0 : i32, i32
  }
  func.func @transform_9(%arg0: i32) -> (i32, i32) {
    %c0_i32 = arith.constant 0 : i32
    %c0_i32_0 = arith.constant 0 : i32
    %c0_i32_1 = arith.constant 0 : i32
    return %c0_i32, %c0_i32_0 : i32, i32
  }
  func.func @transform_10(%arg0: i32) -> (i32, i32) {
    %c0_i32 = arith.constant 0 : i32
    %c0_i32_0 = arith.constant 0 : i32
    %c0_i32_1 = arith.constant 0 : i32
    return %c0_i32, %c0_i32_0 : i32, i32
  }
  func.func @transform_11(%arg0: i32) -> (i32, i32) {
    %c0_i32 = arith.constant 0 : i32
    %c0_i32_0 = arith.constant 0 : i32
    %c0_i32_1 = arith.constant 0 : i32
    return %c0_i32, %c0_i32_0 : i32, i32
  }
  func.func @transform_12(%arg0: i32) -> (i32, i32) {
    %c0_i32 = arith.constant 0 : i32
    %c0_i32_0 = arith.constant 0 : i32
    %c0_i32_1 = arith.constant 0 : i32
    return %c0_i32, %c0_i32_0 : i32, i32
  }
  func.func @transform_13(%arg0: i32) -> (i32, i32, i32) {
    %c0_i32 = arith.constant 0 : i32
    %c0_i32_0 = arith.constant 0 : i32
    %c0_i32_1 = arith.constant 0 : i32
    return %arg0, %c0_i32, %c0_i32_0 : i32, i32, i32
  }
}

</mosaic_0001>

<bundles_post_ra>
// kernel: tpu_custom_call.1
= control target key start
LH: loop header
LB: loop body
LE: loop exit
PB: predicated region body
PF: predicated region fallthrough
CT: control target
= control target key end

     0   :  { %s2612_s0 = inlined_call_operand.hbm [shape: f32[2,8,64], index: 0, kind: input, shape index: {}]   ;;  %s2613_s1 = inlined_call_operand.vmem [shape: f32[64,192], index: 1, kind: input, shape index: {}]   ;;  %s2614_s2 = inlined_call_operand.vmem [shape: f32[1,192], index: 2, kind: input, shape index: {}]   ;;  %s2615_s3 = inlined_call_operand.vmem [shape: f32[64,64], index: 3, kind: input, shape index: {}]   ;;  %s2616_s4 = inlined_call_operand.vmem [shape: f32[1,64], index: 4, kind: input, shape index: {}]   ;;  %s2617_s5 = inlined_call_operand.vmem [shape: f32[1,64], index: 5, kind: input, shape index: {}]   ;;  %s2618_s6 = inlined_call_operand.vmem [shape: f32[1,64], index: 6, kind: input, shape index: {}]   ;;  %s2619_s7 = inlined_call_operand.vmem [shape: f32[1,64], index: 7, kind: input, shape index: {}]   ;;  %s2620_s8 = inlined_call_operand.vmem [shape: f32[1,64], index: 8, kind: input, shape index: {}]   ;;  %s2621_s9 = inlined_call_operand.hbm [shape: f32[64,128], index: 9, kind: input, shape index: {}]   ;;  %s2622_s10 = inlined_call_operand.vmem [shape: f32[1,128], index: 10, kind: input, shape index: {}]   ;;  %s2623_s11 = inlined_call_operand.vmem [shape: f32[128,64], index: 11, kind: input, shape index: {}]   ;;  %s2624_s12 = inlined_call_operand.vmem [shape: f32[1,64], index: 12, kind: input, shape index: {}]   ;;  %s2625_s13 = inlined_call_operand.hbm [shape: f32[2,8,64], index: 13, kind: output, shape index: {}]  }
   0x1   :  { %2635 = sst [smem:[#allocation15_spill]] %s2621_s9 }
   0x2   :  { %2636 = sst [smem:[#allocation16_spill]] %s2622_s10 }
   0x3   :  { %2637 = sst [smem:[#allocation17_spill]] %s2624_s12 }
   0x4   :  { %2638 = sst [smem:[#allocation18_spill]] %s2625_s13 }
   0x5   :  { %18 = vsyncpa [#allocation3], 0 }
   0x6   :  { %20 = vsyncpa [#allocation3 + $0x1], 0 }
   0x7   :  { %21 = vsyncpa [#allocation6], 0 }
   0x8   :  { %22 = vsyncpa [#allocation4], 0 }
   0x9   :  { %24 = vsyncpa [#allocation4 + $0x1], 0  ;;  %s2183_s25 = smov 0   ;;  %s2185_s26 = smov 0  }
   0xa   :  { %s2187_s27 = smov 0   ;;  %s2189_s28 = smov 0  }
   0xb LB: > { %2639 = sst [smem:[#allocation11_spill]] %s2085_s25  ;;  %s2204_s29 = sadd.s32 4294967295, %s2097_s28   ;;  %s2097_s28 = sphi %s2189_s28, %s2663_s28   ;;  %s2093_s27 = sphi %s2187_s27, %s2667_s27   ;;  %s2089_s26 = sphi %s2185_s26, %s2666_s26   ;;  %s2085_s25 = sphi %s2183_s25, %s2665_s25  }
   0xc   : > { %s1685_s30 = sadd.s32 4294967294, %s2097_s28   ;;  %p50_p0 = scmp.ne.s32.totalorder %s2089_s26, %s2085_s25 }
   0xd   : > { %p2631_p1 = scmp.eq.s32.totalorder %s2204_s29, 0  ;;  %p332_p3 = scmp.eq.s32.totalorder %s1685_s30, 1 }
   0xe   : > { %p1686_p5 = scmp.ge.s32.totalorder %s2097_s28, 1  ;;  %p339_p7 = scmp.lt.s32.totalorder %s2097_s28, 3 }
   0xf   : > { %p2213_p4 = por %p2631_p1, %p50_p0  ;;  %p2218_p6 = por %p332_p3, %p50_p0 }
  0x10   : > { %p2223_p8 = pnand %p1686_p5, %p339_p7  ;;  %s2099_s17 = smov [#allocation5]  }
  0x11   : > { %s2640_s14 = scalar_select %p2213_p4, 1, 0 }
  0x12   : > { %s2641_s15 = scalar_select %p2218_p6, 1, 0 }
  0x13   : > { %s2643_s16 = scalar_select %p2223_p8, 1, 0 }
  0x14   : > { %2642 = sst [smem:[#allocation12_spill]] %s2641_s15  ;;  %s375_s18 = sshll.u32 %s2099_s17, 4  ;;  %s376_s18 = int_to_ptr.vmem [resolvable:$true] %s375_s18 }
  0x15   : > { %p1893_p9 = pneg %p2223_p8  ;;  %s2237_s20 = sadd.s32 1, %s2097_s28  }
  0x16   : > { %2645 = sst [smem:[#allocation13_spill]] %s2237_s20  ;;  %s37_s21 = sadd.s32 1, %s2093_s27 }
  0x17   : > { %p2232_p11 = pnand %p1893_p9, %p2631_p1  ;;  %s34_s22 = ssub.s32 %s2097_s28, %s2237_s20 }
  0x18   : > { %s1986_s23 = scalar_lea.vmem %s376_s18, 1024  ;;  %p1994_p5 = scmp.lt.s32.totalorder %s376_s18, %s376_s18 }
  0x19   : > { %p1977_p12 = pneg %p2232_p11  ;;  %p1987_p13 = scmp.ne.s32.totalorder %s376_s18, %s1986_s23 }
  0x1a   : > { %p1995_p7 = scmp.lt.s32.totalorder %s1986_s23, %s1986_s23 }
  0x1b   : > { %p1989_p0 = pnand %p1987_p13, %p1977_p12 }
  0x1c   : > { %p1996_p10 = por %p1995_p7, %p1994_p5 }
  0x1d   : > { %p1990_p3 = pneg %p1989_p0 }
  0x1f   : > { %p1997_p2 = pnand %p1996_p10, %p1990_p3 }
  0x21   : > { %2000 = shalt.err (!%p1997_p2)
}
  0x22   : > { %s2100_s24 = smov 128   ;;  %s2101_s30 = smov 8  }
  0x23   : > { %s2646_s9 = sld [smem:[#allocation15_spill]]  ;;  %p35_p9 = scmp.eq.s32.totalorder %s34_s22, 0 }
  0x24   : > { %p44_p12 = scmp.ne.s32.totalorder %s2093_s27, %s2089_s26  ;;  %p45_p10 = scmp.eq.s32.totalorder %s2097_s28, 0 }
  0x25   : > { %p1906_p2 = scmp.lt.s32.totalorder %s2097_s28, 2  ;;  %p2648_p0 = scmp.eq.s32.totalorder %s2204_s29, 1 }
  0x26   : > { %s2254_s23 = scalar_select %p35_p9, %s2093_s27, %s37_s21  }
  0x27   : > { %p46_p13 = por %p45_p10, %p44_p12  ;;  %p2258_p3 = por %p2648_p0, %p44_p12 }
  0x28   : > { %2647 = sst [smem:[#allocation14_spill]] %s2254_s23  ;;  %s398_s25 = sand.u32 1, %s2093_s27  }
  0x29   : > { %1896 = dma.hbm_to_vmem [thread:$0]  (!%p2232_p11), %s2646_s9, 1024, %s376_s18, [#allocation6], %s2100_s24, %s2100_s24, %s2101_s30  }
  0x2a   : > { %s2649_s15 = scalar_select %p2258_p3, 1, 0 }
  0x2b   : > { %s1690_s13 = sshll.u32 %s2097_s28, 7  ;;  %s1689_s12 = sshll.u32 %s398_s25, 3 }
  0x2c   : > { %s2267_s20 = scalar_lea.hbm %s2612_s0, %s1690_s13  ;;  %s402_s18 = scalar_lea.vmem [#allocation2], %s1689_s12 }
  0x2d   : > { %s409_s21 = sshll.u32 %s402_s18, 4  ;;  %p2269_p11 = pnand %p1906_p2, %p46_p13  ;;  %s410_s21 = int_to_ptr.vmem [resolvable:$true] %s409_s21 }
  0x2e   : > { %s399_s24 = scalar_lea.sflag [#allocation3], %s398_s25  ;;  %s2001_s30 = scalar_lea.hbm %s2267_s20, 128 }
  0x2f   : > { %p2002_p5 = scmp.ne.s32.totalorder %s2267_s20, %s2001_s30  ;;  %p2003_p7 = pneg %p2269_p11 }
  0x30   : > { %s2006_s17 = scalar_lea.hbm %s2612_s0, 256  ;;  %p2007_p10 = scmp.lt.s32.totalorder %s2267_s20, %s2612_s0 }
  0x31   : > { %p2004_p9 = pnand %p2003_p7, %p2002_p5  ;;  %p2008_p2 = scmp.lt.s32.totalorder %s2006_s17, %s2001_s30 }
  0x33   : > { %p2005_p12 = pneg %p2004_p9  ;;  %p2009_p13 = por %p2008_p2, %p2007_p10 }
  0x35   : > { %p2010_p0 = pnand %p2009_p13, %p2005_p12 }
  0x37   : > { %2013 = shalt.err (!%p2010_p0)
}
  0x38   : > { %s2014_s18 = scalar_lea.vmem %s410_s21, 128  ;;  %s2102_s25 = smov [#allocation2]  }
  0x39   : > { %p2015_p1 = scmp.ne.s32.totalorder %s410_s21, %s2014_s18  ;;  %s2019_s9 = sshll.u32 %s2102_s25, 4  ;;  %s2020_s9 = int_to_ptr.vmem [resolvable:$false] %s2019_s9 }
  0x3a   : > { %s2021_s23 = scalar_lea.vmem %s2020_s9, 256  ;;  %p2022_p5 = scmp.lt.s32.totalorder %s410_s21, %s2020_s9 }
  0x3b   : > { %p2017_p6 = pnand %p2015_p1, %p2003_p7  ;;  %p2023_p9 = scmp.lt.s32.totalorder %s2021_s23, %s2014_s18 }
  0x3d   : > { %p2018_p3 = pneg %p2017_p6  ;;  %p2024_p4 = por %p2023_p9, %p2022_p5 }
  0x3f   : > { %p2025_p8 = pnand %p2024_p4, %p2018_p3 }
  0x41   : > { %2028 = shalt.err (!%p2025_p8)
}
  0x42   : > { %1900 = dma.hbm_to_vmem [thread:$0]  (!%p2269_p11), %s2267_s20, 128, %s410_s21, %s399_s24  }
  0x43   : > { %p2651_p12 = scmp.ne.s32.totalorder %s2643_s16, 0 }
  0x44   : > { %s2290_s30 = sand.u32 (!%p2651_p12), 1, %s2089_s26   ;;  %p2652_p1 = scmp.ne.s32.totalorder (!%p2651_p12), %s2640_s14, 0 }
  0x45   : > { %418 = sbr.rel (%p2651_p12) target bundleno = 2689 (0xa81), region = 72  ;;  %s1692_s10 = sshll.u32 (!%p2651_p12), %s2290_s30, 3 }
  0x46   : > { %s421_s9 = scalar_lea.sflag (!%p2651_p12), [#allocation3], %s2290_s30  ;;  %s424_s23 = scalar_lea.vmem (!%p2651_p12), [#allocation2], %s1692_s10 }
  0x4a   : > { %2072 = dma.done.wait (%p2652_p1), %s421_s9, 128  }
  0x4b   : > { %2074 = vsyncadd (%p2652_p1), %s421_s9, 4294967168  ;;  %p2653_p4 = scmp.eq.s32.totalorder %s2204_s29, 0 }
  0x4d   : > { %2076 = dma.done.wait (%p2653_p4), [#allocation6], 1024   ;;  %p2654_p6 = pmov %p2653_p4 }
  0x4e   : > { %vm474_vm0 = vcmask 523264   ;;  %v2304_v0 = vld [vmem:[%s424_s23] sm:$0xff]  ;;  %v520_v4 = vld [vmem:[%s2613_s1 + $0x78] sm:$0xff]  ;;  %v519_v5 = vld [vmem:[%s2613_s1 + $0x70] sm:$0xff]  ;;  %v2103_v8 = vmov 0.0   ;;  %v523_v35 = vlaneseq  ;;  %vm2104_vm1 = vmmov 0  }
  0x4f   : > { %2078 = vsyncadd (%p2654_p6), [#allocation6], 4294966272  ;;  %v475_v1 = vsel %vm474_vm0, %v2304_v0, 0.0  ;;  %v480_v2 = vmul.f32 %v2304_v0, %v2304_v0  ;;  %v518_v6 = vld [vmem:[%s2613_s1 + $0x68] sm:$0xff]  ;;  %552 = vmatprep.subr.mxu1 %v520_v4  ;;  %v517_v7 = vld [vmem:[%s2613_s1 + $0x60] sm:$0xff]  ;;  %600 = vmatprep.mubr.f32.mxu1 %v2103_v8  ;;  %s2105_s18 = smov 48  }
  0x50   : > { %476 = vadd.xlane.f32.xlu0 %v475_v1  ;;  %553 = vmatpush1.msra.mxu1 %v519_v5  ;;  %v516_v9 = vld [vmem:[%s2613_s1 + $0x58] sm:$0xff]  ;;  %v515_v10 = vld [vmem:[%s2613_s1 + $0x50] sm:$0xff]  ;;  %v514_v11 = vld [vmem:[%s2613_s1 + $0x48] sm:$0xff]  ;;  %v524_v36 = vshrl.u32 %v523_v35, 7  ;;  %s2106_s25 = smov 64   ;;  %vm610_vm2 = vcmask 130048  }
  0x51   : > { %v481_v3 = vsel %vm474_vm0, %v480_v2, 0.0  ;;  %1792 = vmatprep.subr.mxu0 %v2103_v8  ;;  %554 = vmatprep.subr.mxu1 %v518_v6  ;;  %v513_v12 = vld [vmem:[%s2613_s1 + $0x40] sm:$0xff]  ;;  %v512_v13 = vld [vmem:[%s2613_s1 + $0x38] sm:$0xff]  ;;  %v511_v14 = vld [vmem:[%s2613_s1 + $0x30] sm:$0xff]  ;;  %vm685_vm3 = vcmask 64512   ;;  %s2107_s9 = smov 96  }
  0x52   : > { %555 = vmatpush1.msra.mxu1 %v517_v7  ;;  %v510_v15 = vld [vmem:[%s2613_s1 + $0x28] sm:$0xff]  ;;  %v509_v16 = vld [vmem:[%s2613_s1 + $0x20] sm:$0xff]  ;;  %v508_v17 = vld [vmem:[%s2613_s1 + $0x18] sm:$0xff]  ;;  %1794 = vmatprep.mubr.msk.f32.mxu0 %vm2104_vm1, %v2103_v8  ;;  %v525_v37 = vsub.s32 0, %v524_v36  ;;  %v529_v42 = vsub.s32 1, %v524_v36  ;;  %s2108_s23 = smov 112  }
  0x53   : > { %556 = vmatprep.subr.mxu1 %v516_v9  ;;  %v507_v18 = vld [vmem:[%s2613_s1 + $0x10] sm:$0xff]  ;;  %v506_v19 = vld [vmem:[%s2613_s1 + $0x8] sm:$0xff]  ;;  %v505_v20 = vld [vmem:[%s2613_s1] sm:$0xff]  ;;  %s2109_s14 = smov 32   ;;  %s2110_s16 = smov 16   ;;  %vm1279_vm4 = vcmask 261120  }
  0x54   : > { %482 = vadd.xlane.f32.xlu0 %v481_v3  ;;  %557 = vmatpush1.msra.mxu1 %v515_v10  ;;  %v1695_v30 = vld [vmem:[%s2617_s5] ss:$0 sm:$0xff]  ;;  %s2111_s20 = smov 80   ;;  %vm1281_vm5 = vcmask 392192   ;;  %s2655_s13 = sld [smem:[#allocation16_spill]] }
  0x55   : > { %558 = vmatprep.subr.mxu1 %v514_v11  ;;  %v1696_v32 = vld [vmem:[%s2618_s6] ss:$0 sm:$0xff]  ;;  %s470_s19 = scalar_lea.vmem [#allocation7], %s1692_s10  ;;  %s1592_s21 = scalar_lea.sflag [#allocation4], %s2290_s30 }
  0x56   : > { %559 = vmatpush1.msra.mxu1 %v513_v12  ;;  %v521_v38 = vld [vmem:[%s2614_s2] sm:$0x3]  ;;  %s1605_s12 = sshll.u32 %s470_s19, 4  ;;  %p2658_p3 = scmp.ne.s32.totalorder %s2649_s15, 0  ;;  %s1606_s12 = int_to_ptr.vmem [resolvable:$true] %s1605_s12 }
  0x57   : > { %560 = vmatprep.subr.mxu1 %v512_v13  ;;  %v526_v39 = vrot.slane %v521_v38, %v525_v37  ;;  %v530_v43 = vrot.slane %v521_v38, %v529_v42  ;;  %v1288_v42 = vld [vmem:[%s2615_s3 + $0x28] sm:$0xff]  ;;  %s2029_s22 = scalar_lea.vmem %s1606_s12, 128 }
  0x58   : > { %561 = vmatpush1.msra.mxu1 %v511_v14  ;;  %p2030_p8 = scmp.ne.s32.totalorder %s1606_s12, %s2029_s22 }
  0x59   : > { %562 = vmatprep.subr.mxu1 %v510_v15 }
  0x5a   : > { %563 = vmatpush1.msra.mxu1 %v509_v16  ;;  %p2031_p11 = pnand %p2030_p8, %p2658_p3 }
  0x5b   : > { %564 = vmatprep.subr.mxu1 %v508_v17 }
  0x5c   : > { %565 = vmatpush1.msra.mxu1 %v507_v18  ;;  %p2032_p7 = pneg %p2031_p11 }
  0x5d   : > { %566 = vmatprep.subr.mxu1 %v506_v19 }
  0x5e   : > { %567 = vmatpush1.msra.mxu1 %v505_v20 }
  0x5f   : > { %1772 = vmatprep.subr.mxu1 %v2103_v8 }
  0xd9   : > { %v477_v21 = vpop.xlane.xlu0 %476 }
  0xda   : > { %v479_v22 = vmul.f32 0.015625, %v477_v21 }
  0xdc   : > { %v485_v24 = vmul.f32 %v479_v22, %v479_v22  ;;  %v487_v28 = vsub.f32 %v2304_v0, %v479_v22 }
  0xdd   : > { %v483_v23 = vpop.xlane.xlu0 %482 }
  0xde   : > { %v484_v25 = vmul.f32 0.015625, %v483_v23 }
  0xe0   : > { %v486_v26 = vsub.f32 %v484_v25, %v485_v24 }
  0xe2   : > { %v488_v27 = vadd.f32 1e-05, %v486_v26 }
  0xe4   : > { %1953 = vrsqrt.f32 %v488_v27 }
  0xf1   : > { %v1954_v29 = vpop.eup %1953 }
  0xf2   : > { %v490_v31 = vmul.f32 %v1954_v29, %v487_v28 }
  0xf4   : > { %v497_v33 = vmul.f32 %v1695_v30, %v490_v31 }
  0xf6   : > { %v504_v34 = vadd.f32 %v1696_v32, %v497_v33 }
  0xf8   : > { %1697 = vmatmul.mubr.msk.f32.vlgmr.msra.gmra.mxu1 %vm474_vm0, %v504_v34 }
  0xf9   : > { %1774 = vmatprep.mubr.msk.f32.mxu1 %vm2104_vm1, %v2103_v8 }
 0x1b8   : > { %v602_v40 = vpop.f32.mrf.mxu1 }
 0x1b9   : > { %v603_v41 = vadd.f32 %v602_v40, %v526_v39  ;;  %v1290_v40 = vld [vmem:[%s2615_s3 + $0x38] sm:$0xff] }
 0x1ba   : > { %v604_v44 = vpop.f32.mrf.mxu1 }
 0x1bb   : > { %772 = vrot.lane.b32.xlu0 %v603_v41, %s2105_s18  ;;  %608 = vrot.lane.b32.xlu1 %v603_v41, %s2106_s25  ;;  %v2380_v46 = vadd.f32 %v604_v44, %v530_v43  ;;  %v1287_v43 = vld [vmem:[%s2615_s3 + $0x20] sm:$0xff]  ;;  %v1286_v44 = vld [vmem:[%s2615_s3 + $0x18] sm:$0xff] }
 0x22d   : > { %v609_v45 = vpop.permute.xlu1 %608  ;;  %v773_v55 = vpop.permute.xlu0 %772 }
 0x22e   : > { %1773 = vmatpush3.xpose.msk.msra.mxu1 %vm610_vm2, %v609_v45  ;;  %v1285_v45 = vld [vmem:[%s2615_s3 + $0x10] sm:$0xff] }
 0x22f   : > { %1777 = vmatprep.subr.mxu1 %v2103_v8 }
 0x231   : > { %1775 = vmatmul.mubr.msk.f32.vlgmr.msra.gmra.mxu1 %vm610_vm2, %v603_v41 }
 0x232   : > { %1778 = vmatpush3.msra.mxu1 %v2380_v46  ;;  %1779 = vmatprep.mubr.msk.f32.mxu1 %vm2104_vm1, %v2103_v8 }
 0x233   : > { %1782 = vmatprep.subr.mxu1 %v2103_v8 }
 0x2f1   : > { %v681_v47 = vpop.f32.mrf.mxu1 }
 0x2f2   : > { %v686_v48 = vsel %vm685_vm3, %v681_v47, -inf }
 0x2f3   : > { %687 = vmax.xlane.f32.xlu1 %v686_v48  ;;  %v1776_v49 = vpop.f32.mrf.mxu1 }
 0x304   : > { %936 = vrot.lane.b32.xlu1 %v603_v41, %s2107_s9 }
 0x37c   : > { %v688_v50 = vpop.xlane.xlu1 %687 }
 0x37d   : > { %v689_v51 = vsub.f32 %v681_v47, %v688_v50  ;;  %v1283_v47 = vld [vmem:[%s2615_s3] sm:$0xff] }
 0x37f   : > { %v690_v52 = vmul.f32 1.442695, %v689_v51 }
 0x380   : > { %v937_v59 = vpop.permute.xlu1 %936 }
 0x381   : > { %1955 = vpow2.f32 %v690_v52 }
 0x38e   : > { %v1956_v53 = vpop.eup %1955 }
 0x38f   : > { %v692_v54 = vsel %vm685_vm3, %v1956_v53, 0.0 }
 0x390   : > { %693 = vadd.xlane.f32.xlu0 %v692_v54 }
 0x3a6   : > { %770 = vrot.lane.b32.xlu0 %v603_v41, %s2108_s23 }
 0x3aa   : > { %938 = vrot.lane.b32.xlu0 %v603_v41, %s2109_s14 }
 0x3ae   : > { %1103 = vrot.lane.b32.xlu0 %v603_v41, %s2110_s16 }
 0x3b2   : > { %1101 = vrot.lane.b32.xlu0 %v603_v41, %s2111_s20  ;;  %v1289_v41 = vld [vmem:[%s2615_s3 + $0x30] sm:$0xff] }
 0x419   : > { %v694_v56 = vpop.xlane.xlu0 %693 }
 0x41a   : > { %1957 = vrcp.f32 %v694_v56 }
 0x41d   : > { %v771_v57 = vpop.permute.xlu0 %770 }
 0x421   : > { %v939_v58 = vpop.permute.xlu0 %938 }
 0x422   : > { %1793 = vmatpush3.xpose.msk.msra.mxu0 %vm610_vm2, %v939_v58 }
 0x423   : > { %1802 = vmatprep.subr.mxu0 %v2103_v8 }
 0x425   : > { %v1104_v60 = vpop.permute.xlu0 %1103  ;;  %1795 = vmatmul.mubr.msk.f32.vlgmr.msra.gmra.mxu0 %vm610_vm2, %v937_v59 }
 0x426   : > { %1803 = vmatpush3.xpose.msk.msra.mxu0 %vm610_vm2, %v1104_v60  ;;  %1804 = vmatprep.mubr.msk.f32.mxu0 %vm2104_vm1, %v2103_v8  ;;  %v1710_v60 = vld [vmem:[%s2616_s4] ss:$0 sm:$0xff] }
 0x427   : > { %v1958_v61 = vpop.eup %1957  ;;  %1812 = vmatprep.subr.mxu0 %v2103_v8 }
 0x428   : > { %v696_v62 = vmul.f32 %v1958_v61, %v1956_v53 }
 0x429   : > { %v1102_v63 = vpop.permute.xlu0 %1101 }
 0x42a   : > { %1780 = vmatmul.mubr.msk.f32.vlgmr.msra.gmra.mxu1 %vm685_vm3, %v696_v62  ;;  %1805 = vmatmul.mubr.msk.f32.vlgmr.msra.gmra.mxu0 %vm610_vm2, %v1102_v63 }
 0x42b   : > { %1783 = vmatpush3.xpose.msk.msra.mxu1 %vm610_vm2, %v773_v55  ;;  %1784 = vmatprep.mubr.msk.f32.mxu1 %vm2104_vm1, %v2103_v8 }
 0x42c   : > { %1787 = vmatprep.subr.mxu1 %v2103_v8  ;;  %1828 = vmatprep.mubr.msk.f32.mxu0 %vm2104_vm1, %v2103_v8 }
 0x42d   : > { %1813 = vmatpush3.msra.mxu0 %v1290_v40  ;;  %v1498_v40 = vld [vmem:[%s2623_s11 + $0x10] sm:$0xff] }
 0x42e   : > { %1785 = vmatmul.mubr.msk.f32.vlgmr.msra.gmra.mxu1 %vm610_vm2, %v771_v57  ;;  %1814 = vmatprep.subr.mxu0 %v2103_v8 }
 0x42f   : > { %1789 = vmatprep.mubr.msk.f32.mxu1 %vm2104_vm1, %v2103_v8  ;;  %1815 = vmatpush3.msra.mxu0 %v1289_v41  ;;  %v1497_v41 = vld [vmem:[%s2623_s11 + $0x8] sm:$0xff] }
 0x430   : > { %1816 = vmatprep.subr.mxu0 %v2103_v8 }
 0x431   : > { %1817 = vmatpush3.msra.mxu0 %v1288_v42  ;;  %v1496_v42 = vld [vmem:[%s2623_s11] sm:$0xff] }
 0x432   : > { %1818 = vmatprep.subr.mxu0 %v2103_v8 }
 0x433   : > { %1819 = vmatpush3.msra.mxu0 %v1287_v43  ;;  %v1714_v43 = vld [vmem:[%s2655_s13] ss:$0 sm:$0xff] }
 0x434   : > { %1820 = vmatprep.subr.mxu0 %v2103_v8 }
 0x435   : > { %1821 = vmatpush3.msra.mxu0 %v1286_v44 }
 0x436   : > { %1822 = vmatprep.subr.mxu0 %v2103_v8 }
 0x437   : > { %1823 = vmatpush3.msra.mxu0 %v1285_v45 }
 0x438   : > { %1824 = vmatprep.subr.mxu0 %v2103_v8 }
 0x4e5   : > { %v1010_v1 = vpop.f32.mrf.mxu0 }
 0x4e6   : > { %v1014_v2 = vsel %vm685_vm3, %v1010_v1, -inf }
 0x4e7   : > { %1015 = vmax.xlane.f32.xlu1 %v1014_v2  ;;  %v1796_v3 = vpop.f32.mrf.mxu0 }
 0x4ea   : > { %v2413_v4 = vpop.f32.mrf.mxu1  ;;  %v1175_v5 = vpop.f32.mrf.mxu0 }
 0x4eb   : > { %v1179_v12 = vsel %vm685_vm3, %v1175_v5, -inf }
 0x4ec   : > { %v1781_v6 = vpop.f32.mrf.mxu1  ;;  %v1806_v7 = vpop.f32.mrf.mxu0 }
 0x4ed   : > { %v1409_v6 = vld [vmem:[#allocation5 + $0x30] sm:$0xff]  ;;  %v1408_v7 = vld [vmem:[#allocation5 + $0x28] sm:$0xff] }
 0x4ee   : > { %v844_v9 = vpop.f32.mrf.mxu1 }
 0x4ef   : > { %v848_v10 = vsel %vm685_vm3, %v844_v9, -inf }
 0x4f0   : > { %849 = vmax.xlane.f32.xlu0 %v848_v10  ;;  %v1786_v11 = vpop.f32.mrf.mxu1  ;;  %v1405_v10 = vld [vmem:[#allocation5 + $0x10] sm:$0xff] }
 0x4f1   : > { %v1404_v11 = vld [vmem:[#allocation5 + $0x8] sm:$0xff] }
 0x4f4   : > { %1180 = vmax.xlane.f32.xlu0 %v1179_v12  ;;  %v1403_v12 = vld [vmem:[#allocation5] sm:$0xff] }
 0x4f8   : > { %860 = vrot.lane.b32.xlu1 %v2380_v46, %s2108_s23  ;;  %s2657_s23 = sld [smem:[#allocation18_spill]] }
 0x4fc   : > { %1190 = vrot.lane.b32.xlu1 %v2380_v46, %s2111_s20 }
 0x570   : > { %v1016_v13 = vpop.xlane.xlu1 %1015 }
 0x571   : > { %v1017_v14 = vsub.f32 %v1010_v1, %v1016_v13  ;;  %v1511_v13 = vld [vmem:[%s2623_s11 + $0x78] sm:$0xff] }
 0x573   : > { %v1018_v15 = vmul.f32 1.442695, %v1017_v14  ;;  %v1510_v14 = vld [vmem:[%s2623_s11 + $0x70] sm:$0xff] }
 0x574   : > { %v861_v16 = vpop.permute.xlu1 %860 }
 0x575   : > { %1959 = vpow2.f32 %v1018_v15  ;;  %1788 = vmatpush3.msra.mxu1 %v861_v16  ;;  %v1509_v15 = vld [vmem:[%s2623_s11 + $0x68] sm:$0xff]  ;;  %v1508_v16 = vld [vmem:[%s2623_s11 + $0x60] sm:$0xff] }
 0x576   : > { %1797 = vmatprep.subr.mxu1 %v2103_v8 }
 0x578   : > { %v1191_v38 = vpop.permute.xlu1 %1190 }
 0x579   : > { %v850_v17 = vpop.xlane.xlu0 %849 }
 0x57a   : > { %v851_v18 = vsub.f32 %v844_v9, %v850_v17  ;;  %v1406_v9 = vld [vmem:[#allocation5 + $0x18] sm:$0xff] }
 0x57c   : > { %v852_v21 = vmul.f32 1.442695, %v851_v18 }
 0x57d   : > { %v1181_v19 = vpop.xlane.xlu0 %1180 }
 0x57e   : > { %v1182_v20 = vsub.f32 %v1175_v5, %v1181_v19  ;;  %v1410_v5 = vld [vmem:[#allocation5 + $0x38] sm:$0xff] }
 0x580   : > { %v1183_v22 = vmul.f32 1.442695, %v1182_v20 }
 0x582   : > { %v1960_v23 = vpop.eup %1959  ;;  %1961 = vpow2.f32 %v1183_v22 }
 0x583   : > { %v1020_v24 = vsel %vm685_vm3, %v1960_v23, 0.0  ;;  %1963 = vpow2.f32 %v852_v21 }
 0x584   : > { %1021 = vadd.xlane.f32.xlu0 %v1020_v24 }
 0x58f   : > { %v1962_v25 = vpop.eup %1961 }
 0x590   : > { %v1185_v26 = vsel %vm685_vm3, %v1962_v25, 0.0  ;;  %v1964_v27 = vpop.eup %1963 }
 0x591   : > { %1186 = vadd.xlane.f32.xlu0 %v1185_v26  ;;  %v854_v28 = vsel %vm685_vm3, %v1964_v27, 0.0  ;;  %v1712_v26 = vld [vmem:[%s2619_s7] ss:$0 sm:$0xff] }
 0x595   : > { %855 = vadd.xlane.f32.xlu0 %v854_v28  ;;  %v1713_v28 = vld [vmem:[%s2620_s8] ss:$0 sm:$0xff] }
 0x5ab   : > { %1025 = vrot.lane.b32.xlu0 %v2380_v46, %s2107_s9  ;;  %v1284_v46 = vld [vmem:[%s2615_s3 + $0x8] sm:$0xff] }
 0x5ac   : > { %1825 = vmatpush3.msra.mxu0 %v1284_v46 }
 0x5ad   : > { %1826 = vmatprep.subr.mxu0 %v2103_v8 }
 0x5ae   : > { %1827 = vmatpush3.msra.mxu0 %v1283_v47 }
 0x5af   : > { %1850 = vmatprep.subr.mxu0 %v2103_v8 }
 0x60d   : > { %v1022_v29 = vpop.xlane.xlu0 %1021 }
 0x61a   : > { %v1187_v30 = vpop.xlane.xlu0 %1186 }
 0x61e   : > { %v856_v31 = vpop.xlane.xlu0 %855 }
 0x61f   : > { %1965 = vrcp.f32 %v856_v31  ;;  %v1507_v31 = vld [vmem:[%s2623_s11 + $0x58] sm:$0xff] }
 0x620   : > { %1967 = vrcp.f32 %v1022_v29 }
 0x621   : > { %1969 = vrcp.f32 %v1187_v30 }
 0x622   : > { %v1026_v35 = vpop.permute.xlu0 %1025 }
 0x62c   : > { %v1966_v32 = vpop.eup %1965 }
 0x62d   : > { %v858_v33 = vmul.f32 %v1966_v32, %v1964_v27  ;;  %v1968_v34 = vpop.eup %1967  ;;  %v1506_v32 = vld [vmem:[%s2623_s11 + $0x50] sm:$0xff] }
 0x62e   : > { %v1024_v36 = vmul.f32 %v1968_v34, %v1960_v23  ;;  %v1970_v37 = vpop.eup %1969  ;;  %v1504_v34 = vld [vmem:[%s2623_s11 + $0x40] sm:$0xff] }
 0x62f   : > { %1790 = vmatmul.mubr.msk.f32.vlgmr.msra.gmra.mxu1 %vm685_vm3, %v858_v33  ;;  %v1189_v39 = vmul.f32 %v1970_v37, %v1962_v25  ;;  %v1505_v33 = vld [vmem:[%s2623_s11 + $0x48] sm:$0xff] }
 0x630   : > { %1798 = vmatpush3.msra.mxu1 %v1026_v35  ;;  %1799 = vmatprep.mubr.msk.f32.mxu1 %vm2104_vm1, %v2103_v8  ;;  %v1503_v35 = vld [vmem:[%s2623_s11 + $0x38] sm:$0xff]  ;;  %v1501_v37 = vld [vmem:[%s2623_s11 + $0x28] sm:$0xff] }
 0x631   : > { %1807 = vmatprep.subr.mxu1 %v2103_v8 }
 0x633   : > { %1800 = vmatmul.mubr.msk.f32.vlgmr.msra.gmra.mxu1 %vm685_vm3, %v1024_v36  ;;  %v1502_v36 = vld [vmem:[%s2623_s11 + $0x30] sm:$0xff] }
 0x634   : > { %1808 = vmatpush3.msra.mxu1 %v1191_v38  ;;  %1809 = vmatprep.mubr.msk.f32.mxu1 %vm2104_vm1, %v2103_v8  ;;  %v1500_v38 = vld [vmem:[%s2623_s11 + $0x20] sm:$0xff] }
 0x635   : > { %1831 = vmatprep.subr.mxu1 %v2103_v8 }
 0x637   : > { %1810 = vmatmul.mubr.msk.f32.vlgmr.msra.gmra.mxu1 %vm685_vm3, %v1189_v39  ;;  %v1499_v39 = vld [vmem:[%s2623_s11 + $0x18] sm:$0xff] }
 0x638   : > { %1847 = vmatprep.mubr.msk.f32.mxu1 %vm2104_vm1, %v2103_v8  ;;  %1832 = vmatpush3.msra.mxu1 %v1410_v5 }
 0x639   : > { %1833 = vmatprep.subr.mxu1 %v2103_v8 }
 0x63a   : > { %1834 = vmatpush3.msra.mxu1 %v1409_v6 }
 0x63b   : > { %1835 = vmatprep.subr.mxu1 %v2103_v8 }
 0x63c   : > { %1836 = vmatpush3.msra.mxu1 %v1408_v7 }
 0x63d   : > { %1837 = vmatprep.subr.mxu1 %v2103_v8 }
 0x6ef   : > { %v932_v48 = vpop.f32.mrf.mxu1 }
 0x6f0   : > { %1267 = vrot.lane.b32.xlu1 %v932_v48, %s2110_s16  ;;  %s2656_s16 = sld [smem:[#allocation17_spill]] }
 0x6f1   : > { %v1791_v49 = vpop.f32.mrf.mxu1 }
 0x6f3   : > { %v1097_v50 = vpop.f32.mrf.mxu1 }
 0x6f4   : > { %1271 = vrot.lane.b32.xlu1 %v1097_v50, %s2109_s14 }
 0x6f5   : > { %v1801_v51 = vpop.f32.mrf.mxu1 }
 0x6f7   : > { %v1262_v52 = vpop.f32.mrf.mxu1 }
 0x6f8   : > { %1275 = vrot.lane.b32.xlu0 %v1262_v52, %s2105_s18  ;;  %s1718_s18 = sshll.u32 %s2204_s29, 7  ;;  %s2112_s29 = smov [#allocation7]  }
 0x6f9   : > { %v1811_v53 = vpop.f32.mrf.mxu1  ;;  %s1603_s20 = scalar_lea.hbm %s2657_s23, %s1718_s18  ;;  %s2033_s10 = sshll.u32 %s2112_s29, 4  ;;  %s2034_s10 = int_to_ptr.vmem [resolvable:$false] %s2033_s10 }
 0x6fa   : > { %s2035_s24 = scalar_lea.vmem %s2034_s10, 256  ;;  %p2036_p10 = scmp.lt.s32.totalorder %s1606_s12, %s2034_s10 }
 0x6fb   : > { %p2037_p2 = scmp.lt.s32.totalorder %s2035_s24, %s2029_s22 }
 0x6fd   : > { %p2038_p13 = por %p2037_p2, %p2036_p10 }
 0x6ff   : > { %p2039_p0 = pnand %p2038_p13, %p2032_p7 }
 0x762   : > { %v1268_v54 = vpop.permute.xlu1 %1267 }
 0x763   : > { %v1278_v56 = vsel %vm610_vm2, %v2413_v4, %v1268_v54 }
 0x766   : > { %v1272_v55 = vpop.permute.xlu1 %1271 }
 0x767   : > { %v1280_v57 = vsel %vm1279_vm4, %v1278_v56, %v1272_v55 }
 0x76a   : > { %v1276_v58 = vpop.permute.xlu0 %1275 }
 0x76b   : > { %v1282_v59 = vsel %vm1281_vm5, %v1280_v57, %v1276_v58 }
 0x76c   : > { %1829 = vmatmul.mubr.msk.f32.vlgmr.msra.gmra.mxu0 %vm474_vm0, %v1282_v59 }
 0x76d   : > { %1882 = vmatprep.mubr.msk.f32.mxu0 %vm2104_vm1, %v2103_v8  ;;  %1851 = vmatpush3.msra.mxu0 %v1511_v13 }
 0x76e   : > { %1852 = vmatprep.subr.mxu0 %v2103_v8 }
 0x76f   : > { %1853 = vmatpush3.msra.mxu0 %v1510_v14 }
 0x770   : > { %1854 = vmatprep.subr.mxu0 %v2103_v8 }
 0x771   : > { %1855 = vmatpush3.msra.mxu0 %v1509_v15 }
 0x772   : > { %1856 = vmatprep.subr.mxu0 %v2103_v8 }
 0x773   : > { %1857 = vmatpush3.msra.mxu0 %v1508_v16 }
 0x774   : > { %1858 = vmatprep.subr.mxu0 %v2103_v8 }
 0x775   : > { %1859 = vmatpush3.msra.mxu0 %v1507_v31 }
 0x776   : > { %1860 = vmatprep.subr.mxu0 %v2103_v8 }
 0x777   : > { %1861 = vmatpush3.msra.mxu0 %v1506_v32 }
 0x778   : > { %1862 = vmatprep.subr.mxu0 %v2103_v8 }
 0x779   : > { %1863 = vmatpush3.msra.mxu0 %v1505_v33 }
 0x77a   : > { %1864 = vmatprep.subr.mxu0 %v2103_v8 }
 0x77b   : > { %1865 = vmatpush3.msra.mxu0 %v1504_v34 }
 0x77c   : > { %1866 = vmatprep.subr.mxu0 %v2103_v8 }
 0x77d   : > { %1867 = vmatpush3.msra.mxu0 %v1503_v35 }
 0x77e   : > { %1868 = vmatprep.subr.mxu0 %v2103_v8 }
 0x77f   : > { %1869 = vmatpush3.msra.mxu0 %v1502_v36 }
 0x780   : > { %1870 = vmatprep.subr.mxu0 %v2103_v8 }
 0x781   : > { %1871 = vmatpush3.msra.mxu0 %v1501_v37 }
 0x782   : > { %1872 = vmatprep.subr.mxu0 %v2103_v8 }
 0x783   : > { %1873 = vmatpush3.msra.mxu0 %v1500_v38 }
 0x784   : > { %1874 = vmatprep.subr.mxu0 %v2103_v8 }
 0x785   : > { %1875 = vmatpush3.msra.mxu0 %v1499_v39 }
 0x786   : > { %1876 = vmatprep.subr.mxu0 %v2103_v8 }
 0x787   : > { %1877 = vmatpush3.msra.mxu0 %v1498_v40 }
 0x788   : > { %1878 = vmatprep.subr.mxu0 %v2103_v8 }
 0x789   : > { %1879 = vmatpush3.msra.mxu0 %v1497_v41 }
 0x78a   : > { %1880 = vmatprep.subr.mxu0 %v2103_v8 }
 0x78b   : > { %1881 = vmatpush3.msra.mxu0 %v1496_v42 }
 0x82c   : > { %v1367_v61 = vpop.f32.mrf.mxu0 }
 0x82d   : > { %v1368_v62 = vadd.f32 %v1710_v60, %v1367_v61 }
 0x82e   : > { %v1830_v63 = vpop.f32.mrf.mxu0 }
 0x82f   : > { %v2482_v1 = vadd.f32 %v1368_v62, %v2304_v0  ;;  %v1407_v0 = vld [vmem:[#allocation5 + $0x20] sm:$0xff] }
 0x830   : > { %1838 = vmatpush3.msra.mxu1 %v1407_v0 }
 0x831   : > { %v1374_v2 = vsel %vm474_vm0, %v2482_v1, 0.0  ;;  %v1378_v3 = vmul.f32 %v2482_v1, %v2482_v1  ;;  %1839 = vmatprep.subr.mxu1 %v2103_v8 }
 0x832   : > { %1375 = vadd.xlane.f32.xlu1 %v1374_v2  ;;  %1840 = vmatpush3.msra.mxu1 %v1406_v9 }
 0x833   : > { %v1379_v4 = vsel %vm474_vm0, %v1378_v3, 0.0  ;;  %1841 = vmatprep.subr.mxu1 %v2103_v8 }
 0x834   : > { %1380 = vadd.xlane.f32.xlu0 %v1379_v4  ;;  %1842 = vmatpush3.msra.mxu1 %v1405_v10 }
 0x835   : > { %1843 = vmatprep.subr.mxu1 %v2103_v8 }
 0x836   : > { %1844 = vmatpush3.msra.mxu1 %v1404_v11 }
 0x837   : > { %1845 = vmatprep.subr.mxu1 %v2103_v8  ;;  %v1716_v8 = vld [vmem:[%s2656_s16] ss:$0 sm:$0xff] }
 0x838   : > { %1846 = vmatpush3.msra.mxu1 %v1403_v12 }
 0x8bb   : > { %v1376_v17 = vpop.xlane.xlu1 %1375 }
 0x8bc   : > { %v1377_v18 = vmul.f32 0.015625, %v1376_v17 }
 0x8bd   : > { %v1381_v19 = vpop.xlane.xlu0 %1380 }
 0x8be   : > { %v1383_v20 = vmul.f32 %v1377_v18, %v1377_v18  ;;  %v1382_v21 = vmul.f32 0.015625, %v1381_v19  ;;  %v1385_v24 = vsub.f32 %v2482_v1, %v1377_v18 }
 0x8c0   : > { %v1384_v22 = vsub.f32 %v1382_v21, %v1383_v20 }
 0x8c2   : > { %v1386_v23 = vadd.f32 1e-05, %v1384_v22 }
 0x8c4   : > { %1971 = vrsqrt.f32 %v1386_v23 }
 0x8d1   : > { %v1972_v25 = vpop.eup %1971 }
 0x8d2   : > { %v1388_v27 = vmul.f32 %v1972_v25, %v1385_v24 }
 0x8d4   : > { %v1395_v29 = vmul.f32 %v1712_v26, %v1388_v27 }
 0x8d6   : > { %v1402_v30 = vadd.f32 %v1713_v28, %v1395_v29 }
 0x8d8   : > { %1848 = vmatmul.mubr.msk.f32.vlgmr.msra.gmra.mxu1 %vm474_vm0, %v1402_v30 }
 0x998   : > { %v1487_v44 = vpop.f32.mrf.mxu1 }
 0x999   : > { %v1488_v45 = vadd.f32 %v1714_v43, %v1487_v44 }
 0x99a   : > { %v1849_v46 = vpop.f32.mrf.mxu1 }
 0x99b   : > { %v1492_v47 = vmul.f32 0.70710677, %v1488_v45  ;;  %v1491_v49 = vmul.f32 0.5, %v1488_v45 }
 0x99d   : > { %1973 = verf.f32 %v1492_v47 }
 0x9aa   : > { %v1974_v48 = vpop.eup %1973 }
 0x9ab   : > { %v1494_v50 = vadd.f32 1.0, %v1974_v48 }
 0x9ad   : > { %v1495_v51 = vmul.f32 %v1494_v50, %v1491_v49 }
 0x9af   : > { %1883 = vmatmul.mubr.f32.vlgmr.msra.gmra.mxu0 %v1495_v51 }
 0xa6f   : > { %v1585_v52 = vpop.f32.mrf.mxu0 }
 0xa70   : > { %v1586_v53 = vadd.f32 %v1716_v8, %v1585_v52 }
 0xa71   : > { %v1884_v54 = vpop.f32.mrf.mxu0 }
 0xa72   : > { %v1589_v55 = vadd.f32 %v1586_v53, %v2482_v1 }
 0xa74   : > { %1590 = vst.msk [vmem:[%s470_s19] sm:$0xff] %vm474_vm0, %v1589_v55 }
 0xa75   : > { %2042 = shalt.err (!%p2039_p0)
}
 0xa76   : > { %s2043_s13 = scalar_lea.hbm %s1603_s20, 128  ;;  %s2047_s14 = scalar_lea.hbm %s2657_s23, 256 }
 0xa77   : > { %p2044_p5 = scmp.ne.s32.totalorder %s1603_s20, %s2043_s13  ;;  %p2048_p1 = scmp.lt.s32.totalorder %s1603_s20, %s2657_s23 }
 0xa78   : > { %p2049_p4 = scmp.lt.s32.totalorder %s2047_s14, %s2043_s13 }
 0xa79   : > { %p2045_p9 = pnand %p2044_p5, %p2658_p3 }
 0xa7a   : > { %p2050_p6 = por %p2049_p4, %p2048_p1 }
 0xa7b   : > { %p2046_p12 = pneg %p2045_p9 }
 0xa7d   : > { %p2051_p8 = pnand %p2050_p6, %p2046_p12 }
 0xa7f   : > { %2054 = shalt.err (!%p2051_p8)
}
 0xa80   : > { %1891 = dma.vmem_to_hbm [thread:$0]  (%p2658_p3), %s1606_s12, 128, %s1603_s20, %s1592_s21  }
 0xa81 PF: > { %s2659_s19 = sld [smem:[#allocation11_spill]]  ;;  %p2662_p7 = scmp.ge.s32.totalorder %s2097_s28, 2 }
 0xa82   : > { %s2660_s25 = sld [smem:[#allocation12_spill]] }
 0xa87   : > { %s1617_s9 = sand.u32 1, %s2659_s19  }
 0xa88   : > { %p2661_p11 = scmp.ne.s32.totalorder %s2660_s25, 0  ;;  %s1618_s22 = scalar_lea.sflag [#allocation4], %s1617_s9 }
 0xa8a   : > { %p1902_p10 = pnand %p2662_p7, %p2661_p11 }
 0xa8c   : > { %p1903_p2 = pneg %p1902_p10 }
 0xa8e   : > { %2080 = dma.done.wait (%p1903_p2), %s1618_s22, 128  }
 0xa8f   : > { %2082 = vsyncadd (%p1903_p2), %s1618_s22, 4294967168  ;;  %s2663_s28 = sld [smem:[#allocation13_spill]]  ;;  %s2665_s25 = smov %s2089_s26 }
 0xa90   : > { %s2664_s29 = sld [smem:[#allocation14_spill]]  ;;  %s2666_s26 = smov %s2093_s27 }
 0xa95   : > { %p27_p13 = scmp.ge.s32.totalorder %s2663_s28, 4  }
 0xa96   : > { %s2667_s27 = smov %s2664_s29 }
 0xa97   :  { %29 = sbr.rel (!%p27_p13) target bundleno = 11 (0xb), region = 121 }
 0xa9c   :  { %1623 = vsyncpa [#allocation3], 1 }
 0xa9d   :  { %1625 = vsyncpa [#allocation3 + $0x1], 1 }
 0xa9e   :  { %1626 = vsyncpa [#allocation6], 1 }
 0xa9f   :  { %1627 = vsyncpa [#allocation4], 1 }
 0xaa0   :  { %1629 = vsyncpa [#allocation4 + $0x1], 1 }

</bundles_post_ra>
